<compile_context>
chip_gen: v5e
topology: v5e:2x2
jax: 0.10.0
libtpu: 0.0.40
codegen_flags: <defaults>
</compile_context>

<pallas_src>
import functools

import jax
import jax.numpy as jnp
from jax.experimental import pallas as pl
from jax.experimental.pallas import tpu as pltpu

_LANE = 128
_SUBLANE = 8
_NEG_FILL = -1e30  # finite "-inf": exp() underflows to exactly 0, stays NaN-free


def _soft_ce_kernel(scores_ref, labels_ref, partial_ref, *,
                    inv_temp: float, tile_b: int, true_b: int):
    i = pl.program_id(0)

    # (tile_b, n_pad) tiles, compute in f32 for numerical stability.
    s = scores_ref[...].astype(jnp.float32) * inv_temp
    t = labels_ref[...].astype(jnp.float32) * inv_temp

    # logsumexp pieces of the student scores.
    s_max = jnp.max(s, axis=1, keepdims=True)
    lse = jnp.log(jnp.sum(jnp.exp(s - s_max), axis=1, keepdims=True))

    # Unnormalized teacher weights.
    t_max = jnp.max(t, axis=1, keepdims=True)
    t_exp = jnp.exp(t - t_max)
    t_sum = jnp.sum(t_exp, axis=1, keepdims=True)

    # Per-row CE: sum_j softmax(t)_j * (logsumexp(s) - s_j)
    #           = sum_j t_exp_j * ((lse + s_max) - s_j) / sum_j t_exp_j
    num = jnp.sum(t_exp * ((lse + s_max) - s), axis=1, keepdims=True)
    per_row = num * pl.reciprocal(t_sum, approx=False)  # (tile_b, 1)

    # Mask rows introduced by batch padding.
    row_ids = i * tile_b + jax.lax.broadcasted_iota(jnp.int32, per_row.shape, 0)
    per_row = jnp.where(row_ids < true_b, per_row, 0.0)

    partial_ref[0, 0] = jnp.sum(per_row)


def _choose_tile(batch: int, n_pad: int, itemsize: int):
    """Pick a batch tile and VMEM limit from the physical VMEM of this chip."""
    try:
        vmem_cap = int(pltpu.get_tpu_info().vmem_capacity_bytes)
    except Exception:
        vmem_cap = 64 * 1024 * 1024  # conservative (v7x per-TensorCore)

    budget = int(vmem_cap * 0.4)  # working-set budget for this kernel
    # 2 inputs x 2 pipeline buffers x itemsize, plus ~4 f32-sized temporaries.
    bytes_per_elem = 2 * 2 * itemsize + 4 * 4
    tile_b = budget // (bytes_per_elem * n_pad)
    tile_b = (int(tile_b) // _SUBLANE) * _SUBLANE
    tile_b = max(_SUBLANE, min(tile_b, 1024))
    # Never tile more rows than the (sublane-rounded) batch actually has.
    b_round = ((batch + _SUBLANE - 1) // _SUBLANE) * _SUBLANE
    tile_b = min(tile_b, b_round)

    est = (2 * 2 * itemsize + 6 * 4) * tile_b * n_pad + (1 << 20)
    vmem_limit = max(32 * 1024 * 1024, min(int(est * 1.3), int(vmem_cap * 0.75)))
    return tile_b, vmem_limit


def soft_cross_entropy_loss(scores: jax.Array, labels: jax.Array,
                            temperature: float = 1.5) -> jax.Array:
    if scores.shape != labels.shape:
        raise ValueError(f"Shape mismatch: scores {scores.shape} != labels {labels.shape}")

    B, N = scores.shape
    itemsize = jnp.dtype(scores.dtype).itemsize

    # Lane-align the candidate (softmax) axis.
    n_pad = max(_LANE, ((N + _LANE - 1) // _LANE) * _LANE)
    tile_b, vmem_limit = _choose_tile(B, n_pad, itemsize)
    b_pad = ((B + tile_b - 1) // tile_b) * tile_b

    if b_pad != B or n_pad != N:
        pad = ((0, b_pad - B), (0, n_pad - N))
        scores_p = jnp.pad(scores, pad, constant_values=_NEG_FILL)
        labels_p = jnp.pad(labels, pad, constant_values=_NEG_FILL)
    else:
        scores_p, labels_p = scores, labels

    grid = b_pad // tile_b
    kernel = functools.partial(
        _soft_ce_kernel,
        inv_temp=1.0 / float(temperature),
        tile_b=tile_b,
        true_b=B,
    )

    partials = pl.pallas_call(
        kernel,
        out_shape=jax.ShapeDtypeStruct((grid, 1), jnp.float32),
        grid=(grid,),
        in_specs=[
            pl.BlockSpec((tile_b, n_pad), lambda i: (i, 0)),
            pl.BlockSpec((tile_b, n_pad), lambda i: (i, 0)),
        ],
        out_specs=pl.BlockSpec((1, 1), lambda i: (i, 0),
                               memory_space=pltpu.MemorySpace.SMEM),
        compiler_params=pltpu.CompilerParams(
            dimension_semantics=("parallel",),
            vmem_limit_bytes=vmem_limit,
        ),
    )(scores_p, labels_p)

    return jnp.sum(partials) / jnp.float32(B)


def _reference(scores, labels, temperature=1.5):
    s = scores.astype(jnp.float32) / temperature
    t = labels.astype(jnp.float32) / temperature
    log_probs = jax.nn.log_softmax(s, axis=1)
    teacher_probs = jax.nn.softmax(t, axis=1)
    return -jnp.sum(teacher_probs * log_probs, axis=1).mean()


if __name__ == "__main__":
    key = jax.random.PRNGKey(0)

    # Test 1: shape from the module docstring (batch_size, num_candidates).
    k1, k2, k3, k4 = jax.random.split(key, 4)
    scores = jax.random.normal(k1, (2, 8), dtype=jnp.float32)
    labels = jax.random.normal(k2, (2, 8), dtype=jnp.float32)
    loss = soft_cross_entropy_loss(scores, labels, temperature=1.5)
    jax.block_until_ready(loss)
    ref = _reference(scores, labels, temperature=1.5)
    assert jnp.allclose(loss, ref, atol=1e-5, rtol=1e-5), (loss, ref)

    # Test 2: non-aligned batch and candidate dims (exercises padding + masking).
    scores2 = jax.random.normal(k3, (5, 200), dtype=jnp.float32)
    labels2 = jax.random.normal(k4, (5, 200), dtype=jnp.float32)
    loss2 = soft_cross_entropy_loss(scores2, labels2, temperature=1.5)
    jax.block_until_ready(loss2)
    ref2 = _reference(scores2, labels2, temperature=1.5)
    assert jnp.allclose(loss2, ref2, atol=1e-5, rtol=1e-5), (loss2, ref2)

    print("KERNEL_OK")
</pallas_src>

<mosaic_0001>
module attributes {stable_mosaic.version = 11 : i64} {
  func.func @_soft_ce_kernel(%arg0: i32, %arg1: memref<8x128xf32, #tpu.memory_space<vmem>>, %arg2: memref<8x128xf32, #tpu.memory_space<vmem>>, %arg3: memref<1x1xf32, #tpu.memory_space<smem>>) attributes {dimension_semantics = [#tpu.dimension_semantics<parallel>], iteration_bounds = array<i64: 1>, scalar_prefetch = 0 : i64, scratch_operands = 0 : i64, tpu.core_type = #tpu.core_type<tc>, window_params = [{transform_indices = @transform_0, window_bounds = array<i64: 8, 128>}, {transform_indices = @transform_1, window_bounds = array<i64: 8, 128>}, {transform_indices = @transform_2, window_bounds = array<i64: 1, 1>}]} {
    %c0 = arith.constant 0 : index
    %c0_0 = arith.constant 0 : index
    %0 = vector.load %arg1[%c0, %c0_0] : memref<8x128xf32, #tpu.memory_space<vmem>>, vector<8x128xf32>
    %cst = arith.constant 0.666666686 : f32
    %1 = vector.broadcast %cst : f32 to vector<8x128xf32>
    %2 = arith.mulf %0, %1 : vector<8x128xf32>
    %c0_1 = arith.constant 0 : index
    %c0_2 = arith.constant 0 : index
    %3 = vector.load %arg2[%c0_1, %c0_2] : memref<8x128xf32, #tpu.memory_space<vmem>>, vector<8x128xf32>
    %cst_3 = arith.constant 0.666666686 : f32
    %4 = vector.broadcast %cst_3 : f32 to vector<8x128xf32>
    %5 = arith.mulf %3, %4 : vector<8x128xf32>
    %cst_4 = arith.constant dense<0xFF800000> : vector<8xf32>
    %6 = vector.multi_reduction <maximumf>, %2, %cst_4 [1] : vector<8x128xf32> to vector<8xf32>
    %7 = vector.shape_cast %6 : vector<8xf32> to vector<8x1xf32>
    %8 = vector.broadcast %7 : vector<8x1xf32> to vector<8x128xf32>
    %9 = arith.subf %2, %8 : vector<8x128xf32>
    %10 = math.exp %9 : vector<8x128xf32>
    %cst_5 = arith.constant dense<0.000000e+00> : vector<8xf32>
    %11 = vector.multi_reduction <add>, %10, %cst_5 [1] : vector<8x128xf32> to vector<8xf32>
    %12 = vector.shape_cast %11 : vector<8xf32> to vector<8x1xf32>
    %13 = math.log %12 : vector<8x1xf32>
    %cst_6 = arith.constant dense<0xFF800000> : vector<8xf32>
    %14 = vector.multi_reduction <maximumf>, %5, %cst_6 [1] : vector<8x128xf32> to vector<8xf32>
    %15 = vector.shape_cast %14 : vector<8xf32> to vector<8x1xf32>
    %16 = vector.broadcast %15 : vector<8x1xf32> to vector<8x128xf32>
    %17 = arith.subf %5, %16 : vector<8x128xf32>
    %18 = math.exp %17 : vector<8x128xf32>
    %cst_7 = arith.constant dense<0.000000e+00> : vector<8xf32>
    %19 = vector.multi_reduction <add>, %18, %cst_7 [1] : vector<8x128xf32> to vector<8xf32>
    %20 = vector.shape_cast %19 : vector<8xf32> to vector<8x1xf32>
    %21 = arith.addf %13, %7 : vector<8x1xf32>
    %22 = vector.broadcast %21 : vector<8x1xf32> to vector<8x128xf32>
    %23 = arith.subf %22, %2 : vector<8x128xf32>
    %24 = arith.mulf %18, %23 : vector<8x128xf32>
    %cst_8 = arith.constant dense<0.000000e+00> : vector<8xf32>
    %25 = vector.multi_reduction <add>, %24, %cst_8 [1] : vector<8x128xf32> to vector<8xf32>
    %26 = vector.shape_cast %25 : vector<8xf32> to vector<8x1xf32>
    %27 = tpu.reciprocal %20 : vector<8x1xf32> -> vector<8x1xf32>
    %28 = arith.mulf %26, %27 : vector<8x1xf32>
    %c8_i32 = arith.constant 8 : i32
    %29 = arith.muli %arg0, %c8_i32 : i32
    %30 = tpu.iota {dimensions = array<i32: 0>} : vector<8x1xi32>
    %31 = vector.broadcast %29 : i32 to vector<8x1xi32>
    %32 = arith.addi %31, %30 : vector<8x1xi32>
    %c2_i32 = arith.constant 2 : i32
    %33 = vector.broadcast %c2_i32 : i32 to vector<8x1xi32>
    %34 = arith.cmpi slt, %32, %33 : vector<8x1xi32>
    %cst_9 = arith.constant 0.000000e+00 : f32
    %35 = vector.broadcast %cst_9 : f32 to vector<8x1xf32>
    %36 = arith.select %34, %28, %35 : vector<8x1xi1>, vector<8x1xf32>
    %37 = vector.shape_cast %36 : vector<8x1xf32> to vector<1x8x1xf32>
    %cst_10 = arith.constant dense<0.000000e+00> : vector<1xf32>
    %38 = vector.multi_reduction <add>, %37, %cst_10 [1, 2] : vector<1x8x1xf32> to vector<1xf32>
    %39 = vector.shape_cast %38 : vector<1xf32> to vector<1x1x1xf32>
    %40 = vector.extract %39[0, 0, 0] : f32 from vector<1x1x1xf32>
    %c0_11 = arith.constant 0 : index
    %c0_12 = arith.constant 0 : index
    %41 = memref.load %arg3[%c0_11, %c0_12] : memref<1x1xf32, #tpu.memory_space<smem>>
    memref.store %40, %arg3[%c0_11, %c0_12] : memref<1x1xf32, #tpu.memory_space<smem>>
    return
  }
  func.func @transform_0(%arg0: i32) -> (i32, i32) {
    %c0_i32 = arith.constant 0 : i32
    %c0_i32_0 = arith.constant 0 : i32
    return %arg0, %c0_i32 : i32, i32
  }
  func.func @transform_1(%arg0: i32) -> (i32, i32) {
    %c0_i32 = arith.constant 0 : i32
    %c0_i32_0 = arith.constant 0 : i32
    return %arg0, %c0_i32 : i32, i32
  }
  func.func @transform_2(%arg0: i32) -> (i32, i32) {
    %c0_i32 = arith.constant 0 : i32
    %c0_i32_0 = arith.constant 0 : i32
    return %arg0, %c0_i32 : i32, i32
  }
}

</mosaic_0001>

<bundles_post_ra>
// kernel: tpu_custom_call.1
= control target key start
LH: loop header
LB: loop body
LE: loop exit
PB: predicated region body
PF: predicated region fallthrough
CT: control target
= control target key end

     0   :  { %7 = vsyncpa [#allocation3], 0  ;;  %s223_s0 = inlined_call_operand.hbm [shape: f32[8,128], index: 0, kind: input, shape index: {}]   ;;  %s224_s1 = inlined_call_operand.hbm [shape: f32[8,128], index: 1, kind: input, shape index: {}]   ;;  %s225_s2 = inlined_call_operand.hbm [shape: f32[1,1], index: 2, kind: output, shape index: {}]  }
   0x1   :  { %8 = vsyncpa [#allocation6], 0 }
   0x2   :  { %9 = vsyncpa [#allocation4], 0  ;;  %s15_s11 = sshll.u32 %s223_s0, 4  ;;  %s196_s12 = smov [#allocation2]   ;;  %s16_s11 = int_to_ptr.hbm [resolvable:$true] %s15_s11 }
   0x3   :  { %s17_s13 = sshll.u32 %s196_s12, 4  ;;  %s26_s16 = sshll.u32 %s224_s1, 4  ;;  %s18_s13 = int_to_ptr.vmem [resolvable:$true] %s17_s13  ;;  %s27_s16 = int_to_ptr.hbm [resolvable:$true] %s26_s16 }
   0x4   :  { %20 = dma.hbm_to_vmem [thread:$0]  %s16_s11, 128, %s18_s13, [#allocation3]  }
   0x5   :  { %s197_s17 = smov [#allocation5]  }
   0x6   :  { %s28_s18 = sshll.u32 %s197_s17, 4  ;;  %s29_s18 = int_to_ptr.vmem [resolvable:$true] %s28_s18 }
   0x7   :  { %31 = dma.hbm_to_vmem [thread:$0]  %s27_s16, 128, %s29_s18, [#allocation6]  }
   0x8   :  { %190 = dma.done.wait [#allocation3], 128  }
   0x9   :  { %191 = vsyncadd [#allocation3], 4294967168 }
   0xa   :  { %192 = dma.done.wait [#allocation6], 128  }
   0xb   :  { %193 = vsyncadd [#allocation6], 4294967168  ;;  %v40_v0 = vld [vmem:[#allocation2] sm:$0xff]  ;;  %v42_v2 = vld [vmem:[#allocation5] sm:$0xff]  ;;  %v81_v24 = vlaneseq  ;;  %vm87_vm5 = vcmask 7168   ;;  %s105_s19 = sshll.u32 %s225_s2, 4  ;;  %s106_s19 = int_to_ptr.hbm [resolvable:$true] %s105_s19 }
   0xc   :  { %v41_v1 = vmul.f32 0.6666667, %v40_v0  ;;  %v43_v3 = vmul.f32 0.6666667, %v42_v2  ;;  %s198_s21 = smov [#allocation7]  }
   0xd   :  { %v82_v28 = vshrl.u32 %v81_v24, 7 }
   0xe   :  { %44 = vmax.xlane.f32.xlu0 %v41_v1 }
   0xf   :  { %vm85_vm4 = vcmp.lt.s32.totalorder %v82_v28, 2 }
  0x16   :  { %53 = vmax.xlane.f32.xlu0 %v43_v3 }
  0x81   :  { %v45_v4 = vpop.xlane.xlu0 %44 }
  0x82   :  { %v46_v5 = vsub.f32 %v41_v1, %v45_v4 }
  0x84   :  { %v47_v6 = vmul.f32 1.442695, %v46_v5 }
  0x86   :  { %122 = vpow2.f32 %v47_v6 }
  0x89   :  { %v54_v7 = vpop.xlane.xlu0 %53 }
  0x8a   :  { %v55_v8 = vsub.f32 %v43_v3, %v54_v7 }
  0x8c   :  { %v123_v9 = vpop.eup %122  ;;  %v56_v10 = vmul.f32 1.442695, %v55_v8 }
  0x8d   :  { %49 = vadd.xlane.f32.xlu1 %v123_v9 }
  0x8e   :  { %124 = vpow2.f32 %v56_v10 }
  0x94   :  { %v125_v11 = vpop.eup %124 }
  0x95   :  { %58 = vadd.xlane.f32.xlu1 %v125_v11 }
 0x100   :  { %v50_v12 = vpop.xlane.xlu1 %49 }
 0x101   :  { %126 = vlog2.f32 %v50_v12 }
 0x107   :  { %v127_v13 = vpop.eup %126 }
 0x108   :  { %v52_v14 = vmul.f32 0.6931472, %v127_v13  ;;  %v59_v18 = vpop.xlane.xlu1 %58 }
 0x109   :  { %128 = vrcp.f32 %v59_v18  ;;  %vm70_vm0 = vweird.f32 %v59_v18  ;;  %v76_v23 = vand.u32 2147483648, %v59_v18  ;;  %v74_v26 = vand.u32 2147483647, %v59_v18 }
 0x10a   :  { %v60_v15 = vadd.f32 %v52_v14, %v45_v4 }
 0x10b   :  { %v77_v27 = vor.u32 1.1754944e-38, %v76_v23  ;;  %vm75_vm3 = vcmp.eq.f32.partialorder %v74_v26, 8.507059e+37 }
 0x10c   :  { %v61_v16 = vsub.f32 %v60_v15, %v41_v1 }
 0x10e   :  { %v62_v17 = vmul.f32 %v125_v11, %v61_v16 }
 0x10f   :  { %v129_v19 = vpop.eup %128 }
 0x110   :  { %63 = vadd.xlane.f32.xlu2 %v62_v17  ;;  %v66_v20 = vmul.f32 %v129_v19, %v59_v18  ;;  %vm71_vm1 = vweird.f32 %v129_v19 }
 0x111   :  { %vm72_vm2 = vmor %vm70_vm0, %vm71_vm1 }
 0x112   :  { %v67_v21 = vsub.f32 1.0, %v66_v20 }
 0x114   :  { %v68_v22 = vmul.f32 %v129_v19, %v67_v21 }
 0x116   :  { %v69_v25 = vadd.f32 %v129_v19, %v68_v22 }
 0x118   :  { %v73_v29 = vsel %vm72_vm2, %v129_v19, %v69_v25 }
 0x119   :  { %v78_v30 = vsel %vm75_vm3, %v77_v27, %v73_v29 }
 0x183   :  { %v64_v31 = vpop.xlane.xlu2 %63 }
 0x184   :  { %v79_v32 = vmul.f32 %v78_v30, %v64_v31 }
 0x186   :  { %v86_v33 = vsel %vm85_vm4, %v79_v32, 0.0 }
 0x187   :  { %v88_v34 = vsel %vm87_vm5, %v86_v33, 0.0 }
 0x188   :  { %89 = vadd.xlane.f32.xlu2 %v88_v34 }
 0x1fb   :  { %v90_v35 = vpop.xlane.xlu2 %89 }
 0x1fc   :  { %v91_v36 = vrot.slane %v90_v35, 4 }
 0x1fe   :  { %v92_v37 = vadd.f32 %v91_v36, %v90_v35 }
 0x200   :  { %v93_v38 = vrot.slane %v92_v37, 2 }
 0x202   :  { %v94_v39 = vadd.f32 %v93_v38, %v92_v37 }
 0x204   :  { %v95_v40 = vrot.slane %v94_v39, 1 }
 0x206   :  { %v96_v41 = vadd.f32 %v95_v40, %v94_v39 }
 0x208   :  { %117 = vpush %v96_v41 }
 0x239   :  { %s118_s20 = spop %117 }
 0x23a   :  { %99 = sst [smem:[#allocation7]] %s118_s20 }
 0x23b   :  { %108 = dma.smem_to_hbm %s198_s21, 16, %s106_s19, [#allocation4]  }
 0x23c   :  { %194 = dma.done.wait [#allocation4], 16  }
 0x23d   :  { %195 = vsyncadd [#allocation4], 4294967280 }
 0x23e   :  { %113 = sfence }
 0x23f   :  { %114 = vsyncpa [#allocation3], 1 }
 0x240   :  { %115 = vsyncpa [#allocation6], 1 }
 0x241   :  { %116 = vsyncpa [#allocation4], 1 }

</bundles_post_ra>
